<compile_context>
chip_gen: v7x
topology: tpu7x:2x2x1
jax: 0.10.0
libtpu: 0.0.40
codegen_flags: <defaults>
</compile_context>

<pallas_src>
import functools

import jax
import jax.numpy as jnp
from jax.experimental import pallas as pl
from jax.experimental.pallas import tpu as pltpu


def _cdiv(a, b):
    return -(-a // b)


def _round_up(a, b):
    return _cdiv(a, b) * b


def _label_smooth_ce_kernel(epsilon, num_classes, n_total,
                            logits_ref, targets_ref, out_ref):
    i = pl.program_id(0)

    x = logits_ref[...].astype(jnp.float32)                  # (TM, C)
    tm, c = x.shape

    # Numerically stable log-softmax pieces (per row).  Only the exp consumes
    # (x - m); the other reductions run directly on x (no `shifted` temp).
    m = jnp.max(x, axis=1, keepdims=True)                    # (TM, 1)
    lse = jnp.log(jnp.sum(jnp.exp(x - m), axis=1, keepdims=True))   # (TM, 1)
    sum_x = jnp.sum(x, axis=1, keepdims=True)                # (TM, 1)

    # Logit at the target class via masked reduce (no float one-hot).
    class_ids = jax.lax.broadcasted_iota(jnp.int32, (tm, c), 1)
    tgt_x = jnp.sum(jnp.where(class_ids == targets_ref[...], x, 0.0),
                    axis=1, keepdims=True)                   # (TM, 1)

    # Folded smoothed-CE per row (GLOBAL num_classes / epsilon baked in).
    row_loss = (lse
                - (1.0 - epsilon) * (tgt_x - m)
                - (epsilon / num_classes) * (sum_x - num_classes * m))

    # Mask rows past the true batch size: the ragged last block reads
    # unspecified data, so keep this a select (NaN/Inf-safe), before the sum.
    row_ids = i * tm + jax.lax.broadcasted_iota(jnp.int32, (tm, 1), 0)
    row_loss = jnp.where(row_ids < n_total, row_loss, 0.0)

    # Lane-dense (unmasked) store of the block partial; host reads [:, 0, 0].
    out_ref[...] = jnp.zeros(out_ref.shape, jnp.float32) + jnp.sum(row_loss)


def cross_entropy_label_smooth(inputs, targets, num_classes, epsilon,
                               block_rows=None):
    """inputs: (N, num_classes) float logits (f32 or bf16); targets: (N,) ints.

    Tip: feeding bf16 logits halves HBM traffic (the kernel is HBM-bound on
    v5e/v6e); internally everything is upcast to f32 for exp/log accuracy.
    """
    n, c = inputs.shape
    assert c == num_classes
    itemsize = jnp.dtype(inputs.dtype).itemsize

    # --- per-generation VMEM budgets (v7x: 64 MiB physical; v5e/v6e: 128) ---
    try:
        vmem_cap = int(getattr(pltpu.get_tpu_info(), "vmem_capacity_bytes", 0))
    except Exception:
        vmem_cap = 0
    if vmem_cap <= 0:
        vmem_cap = 64 * 1024 * 1024                     # conservative fallback
    small_vmem = vmem_cap <= 64 * 1024 * 1024           # v7x-class TensorCore
    # Budget is for the f32 working set (upcast + iota/select temporaries all
    # scale with c*4 bytes, regardless of the input itemsize).
    tile_budget_bytes = (4 if small_vmem else 8) * 1024 * 1024
    vmem_limit_bytes = max(32 * 1024 * 1024,
                           min((vmem_cap * 3) // 4, 96 * 1024 * 1024))

    # --- row tile selection --------------------------------------------------
    # sublane packing: 8 rows / vreg for 4-byte input dtypes, 16 for 2-byte.
    sub = 16 if itemsize < 4 else 8
    rows_cap = max(sub, (tile_budget_bytes // (c * 4)) // sub * sub)
    rows_needed = _round_up(n, sub)          # smallest legal tile covering N
    if block_rows is not None:               # explicit override (tests/tuning)
        tm = max(sub, (block_rows // sub) * sub)
    else:
        tm = min(rows_cap, rows_needed)
        # Split into >=2 blocks when possible so the "parallel" axis shards
        # across v7x's two TensorCores (near-neutral on 1-TC v5e/v6e).
        if rows_needed > sub:
            tm = min(tm, max(sub, _round_up(_cdiv(n, 2), sub)))

    num_blocks = _cdiv(n, tm)

    # NOTE: no padding of the logits — ragged last block + in-kernel row mask
    # handle N % tm != 0.  Targets are just reshaped (tiny array).
    targets2d = targets.astype(jnp.int32).reshape(n, 1)

    kernel = functools.partial(_label_smooth_ce_kernel,
                               float(epsilon), int(num_classes), int(n))

    partials = pl.pallas_call(
        kernel,
        out_shape=jax.ShapeDtypeStruct((num_blocks, 8, 128), jnp.float32),
        grid=(num_blocks,),
        in_specs=[
            pl.BlockSpec((tm, c), lambda i: (i, 0)),    # logits row tile
            pl.BlockSpec((tm, 1), lambda i: (i, 0)),    # targets row tile
        ],
        out_specs=pl.BlockSpec((1, 8, 128), lambda i: (i, 0, 0)),
        compiler_params=pltpu.CompilerParams(
            dimension_semantics=("parallel",),
            vmem_limit_bytes=vmem_limit_bytes),
        cost_estimate=pl.CostEstimate(
            flops=8 * n * c,
            transcendentals=n * c + n,
            bytes_accessed=n * c * itemsize + n * 4
                           + num_blocks * 8 * 128 * 4),
    )(inputs, targets2d)

    # tiny cross-block reduction + GLOBAL batch-mean outside the kernel.
    return jnp.sum(partials[:, 0, 0]) / n


def _reference(inputs, targets, num_classes, epsilon):
    log_probs = jax.nn.log_softmax(inputs.astype(jnp.float32), axis=1)
    onehot = jax.nn.one_hot(targets, num_classes, dtype=jnp.float32)
    t = (1.0 - epsilon) * onehot + epsilon / num_classes
    return (-t * log_probs).mean(0).sum()


if __name__ == "__main__":
    epsilon = 0.1
    key = jax.random.PRNGKey(0)
    k1, k2, k3, k4, k5, k6 = jax.random.split(key, 6)

    # Case 1: forced multi-block grid with a ragged final tile
    # (batch=20, TM=8 -> 3 blocks, last block rows 20..23 are OOB/masked).
    num_classes = 16
    batch = 20
    logits = jax.random.normal(k1, (batch, num_classes), dtype=jnp.float32)
    labels = jax.random.randint(k2, (batch,), 0, num_classes, dtype=jnp.int32)
    loss = jax.block_until_ready(
        cross_entropy_label_smooth(logits, labels, num_classes, epsilon,
                                   block_rows=8))
    ref = _reference(logits, labels, num_classes, epsilon)
    assert jnp.allclose(loss, ref, rtol=1e-5, atol=1e-5), (loss, ref)

    # Case 2: automatic tile selection; batch splits into 2 blocks (megacore)
    # with a ragged second block.
    batch2 = 24
    logits2 = jax.random.normal(k3, (batch2, num_classes), dtype=jnp.float32)
    labels2 = jax.random.randint(k4, (batch2,), 0, num_classes, dtype=jnp.int32)
    loss2 = jax.block_until_ready(
        cross_entropy_label_smooth(logits2, labels2, num_classes, epsilon))
    ref2 = _reference(logits2, labels2, num_classes, epsilon)
    assert jnp.allclose(loss2, ref2, rtol=1e-5, atol=1e-5), (loss2, ref2)

    # Case 3: bf16 logits, C=1000 (not a multiple of 128) -> exercises the
    # masked-lane reductions and the low-HBM-traffic input path.
    num_classes3, batch3 = 1000, 16
    logits3 = jax.random.normal(k5, (batch3, num_classes3), dtype=jnp.bfloat16)
    labels3 = jax.random.randint(k6, (batch3,), 0, num_classes3, dtype=jnp.int32)
    loss3 = jax.block_until_ready(
        cross_entropy_label_smooth(logits3, labels3, num_classes3, epsilon))
    ref3 = _reference(logits3, labels3, num_classes3, epsilon)
    assert jnp.allclose(loss3, ref3, rtol=1e-4, atol=1e-4), (loss3, ref3)

    print("KERNEL_OK")
</pallas_src>

<mosaic_0001>
module attributes {stable_mosaic.version = 11 : i64} {
  func.func @_label_smooth_ce_kernel(%arg0: i32, %arg1: memref<8x16xf32, #tpu.memory_space<vmem>>, %arg2: memref<8x1xi32, #tpu.memory_space<vmem>>, %arg3: memref<1x8x128xf32, #tpu.memory_space<vmem>>) attributes {dimension_semantics = [#tpu.dimension_semantics<parallel>], iteration_bounds = array<i64: 3>, scalar_prefetch = 0 : i64, scratch_operands = 0 : i64, tpu.core_type = #tpu.core_type<tc>, window_params = [{transform_indices = @transform_0, window_bounds = array<i64: 8, 16>}, {transform_indices = @transform_1, window_bounds = array<i64: 8, 1>}, {transform_indices = @transform_2, window_bounds = array<i64: 1, 8, 128>}]} {
    %c0 = arith.constant 0 : index
    %c0_0 = arith.constant 0 : index
    %0 = vector.load %arg1[%c0, %c0_0] : memref<8x16xf32, #tpu.memory_space<vmem>>, vector<8x16xf32>
    %cst = arith.constant dense<0xFF800000> : vector<8xf32>
    %1 = vector.multi_reduction <maximumf>, %0, %cst [1] : vector<8x16xf32> to vector<8xf32>
    %2 = vector.shape_cast %1 : vector<8xf32> to vector<8x1xf32>
    %3 = vector.broadcast %2 : vector<8x1xf32> to vector<8x16xf32>
    %4 = arith.subf %0, %3 : vector<8x16xf32>
    %5 = math.exp %4 : vector<8x16xf32>
    %cst_1 = arith.constant dense<0.000000e+00> : vector<8xf32>
    %6 = vector.multi_reduction <add>, %5, %cst_1 [1] : vector<8x16xf32> to vector<8xf32>
    %7 = vector.shape_cast %6 : vector<8xf32> to vector<8x1xf32>
    %8 = math.log %7 : vector<8x1xf32>
    %cst_2 = arith.constant dense<0.000000e+00> : vector<8xf32>
    %9 = vector.multi_reduction <add>, %0, %cst_2 [1] : vector<8x16xf32> to vector<8xf32>
    %10 = vector.shape_cast %9 : vector<8xf32> to vector<8x1xf32>
    %11 = tpu.iota {dimensions = array<i32: 1>} : vector<8x16xi32>
    %c0_3 = arith.constant 0 : index
    %c0_4 = arith.constant 0 : index
    %12 = vector.load %arg2[%c0_3, %c0_4] : memref<8x1xi32, #tpu.memory_space<vmem>>, vector<8x1xi32>
    %13 = vector.broadcast %12 : vector<8x1xi32> to vector<8x16xi32>
    %14 = arith.cmpi eq, %11, %13 : vector<8x16xi32>
    %cst_5 = arith.constant 0.000000e+00 : f32
    %15 = vector.broadcast %cst_5 : f32 to vector<8x16xf32>
    %16 = arith.select %14, %0, %15 : vector<8x16xi1>, vector<8x16xf32>
    %cst_6 = arith.constant dense<0.000000e+00> : vector<8xf32>
    %17 = vector.multi_reduction <add>, %16, %cst_6 [1] : vector<8x16xf32> to vector<8xf32>
    %18 = vector.shape_cast %17 : vector<8xf32> to vector<8x1xf32>
    %19 = arith.subf %18, %2 : vector<8x1xf32>
    %cst_7 = arith.constant 0.899999976 : f32
    %20 = vector.broadcast %cst_7 : f32 to vector<8x1xf32>
    %21 = arith.mulf %20, %19 : vector<8x1xf32>
    %22 = arith.subf %8, %21 : vector<8x1xf32>
    %cst_8 = arith.constant 1.600000e+01 : f32
    %23 = vector.broadcast %cst_8 : f32 to vector<8x1xf32>
    %24 = arith.mulf %23, %2 : vector<8x1xf32>
    %25 = arith.subf %10, %24 : vector<8x1xf32>
    %cst_9 = arith.constant 6.250000e-03 : f32
    %26 = vector.broadcast %cst_9 : f32 to vector<8x1xf32>
    %27 = arith.mulf %26, %25 : vector<8x1xf32>
    %28 = arith.subf %22, %27 : vector<8x1xf32>
    %c8_i32 = arith.constant 8 : i32
    %29 = arith.muli %arg0, %c8_i32 : i32
    %30 = tpu.iota {dimensions = array<i32: 0>} : vector<8x1xi32>
    %31 = vector.broadcast %29 : i32 to vector<8x1xi32>
    %32 = arith.addi %31, %30 : vector<8x1xi32>
    %c20_i32 = arith.constant 20 : i32
    %33 = vector.broadcast %c20_i32 : i32 to vector<8x1xi32>
    %34 = arith.cmpi slt, %32, %33 : vector<8x1xi32>
    %cst_10 = arith.constant 0.000000e+00 : f32
    %35 = vector.broadcast %cst_10 : f32 to vector<8x1xf32>
    %36 = arith.select %34, %28, %35 : vector<8x1xi1>, vector<8x1xf32>
    %cst_11 = arith.constant 0.000000e+00 : f32
    %37 = vector.broadcast %cst_11 : f32 to vector<1x8x128xf32>
    %38 = vector.shape_cast %36 : vector<8x1xf32> to vector<1x8x1xf32>
    %cst_12 = arith.constant dense<0.000000e+00> : vector<1xf32>
    %39 = vector.multi_reduction <add>, %38, %cst_12 [1, 2] : vector<1x8x1xf32> to vector<1xf32>
    %40 = vector.shape_cast %39 : vector<1xf32> to vector<1x1x1xf32>
    %41 = vector.extract %40[0, 0, 0] : f32 from vector<1x1x1xf32>
    %42 = vector.broadcast %41 : f32 to vector<1x8x128xf32>
    %43 = arith.addf %37, %42 : vector<1x8x128xf32>
    %c0_13 = arith.constant 0 : index
    %c0_14 = arith.constant 0 : index
    %c0_15 = arith.constant 0 : index
    %44 = vector.load %arg3[%c0_13, %c0_14, %c0_15] : memref<1x8x128xf32, #tpu.memory_space<vmem>>, vector<1x8x128xf32>
    tpu.vector_store %arg3[%c0_13, %c0_14, %c0_15], %43 {strides = array<i32>} : memref<1x8x128xf32, #tpu.memory_space<vmem>>, vector<1x8x128xf32>,
    return
  }
  func.func @transform_0(%arg0: i32) -> (i32, i32) {
    %c0_i32 = arith.constant 0 : i32
    %c0_i32_0 = arith.constant 0 : i32
    return %arg0, %c0_i32 : i32, i32
  }
  func.func @transform_1(%arg0: i32) -> (i32, i32) {
    %c0_i32 = arith.constant 0 : i32
    %c0_i32_0 = arith.constant 0 : i32
    return %arg0, %c0_i32 : i32, i32
  }
  func.func @transform_2(%arg0: i32) -> (i32, i32, i32) {
    %c0_i32 = arith.constant 0 : i32
    %c0_i32_0 = arith.constant 0 : i32
    %c0_i32_1 = arith.constant 0 : i32
    return %arg0, %c0_i32, %c0_i32_0 : i32, i32, i32
  }
}

</mosaic_0001>

<bundles_post_ra>
// kernel: tpu_custom_call.1
= control target key start
LH: loop header
LB: loop body
LE: loop exit
PB: predicated region body
PF: predicated region fallthrough
CT: control target
= control target key end

     0   :  { %7 = vsyncpa [#allocation3], 0  ;;  %s544_s0 = inlined_call_operand.vmem [shape: f32[20,16], index: 0, kind: input, shape index: {}]   ;;  %s545_s1 = inlined_call_operand.vmem [shape: s32[20,1], index: 1, kind: input, shape index: {}]   ;;  %s546_s2 = inlined_call_operand.hbm [shape: f32[3,8,128], index: 2, kind: output, shape index: {}]  }
   0x1   :  { %9 = vsyncpa [#allocation3 + $0x1], 0  ;;  %s436_s9 = smov 0   ;;  %s438_s10 = smov 0  }
   0x2   :  { %s440_s11 = smov 0   ;;  %s442_s12 = smov 0  }
   0x3 LB: > { %s457_s13 = sadd.s32 4294967295, %s417_s12   ;;  %s296_s14 = sadd.s32 4294967294, %s417_s12   ;;  %s417_s12 = sphi %s442_s12, %s552_s12   ;;  %s413_s11 = sphi %s440_s11, %s551_s11   ;;  %s409_s10 = sphi %s438_s10, %s550_s10   ;;  %s405_s9 = sphi %s436_s9, %s549_s9  }
   0x4   : > { %s461_s15 = sadd.s32 1, %s417_s12   ;;  %s74_s16 = sadd.s32 1, %s413_s11 }
   0x5   : > { %s71_s17 = ssub.s32 %s417_s12, %s461_s15  ;;  %p84_p0 = scmp.ne.s32.totalorder %s413_s11, %s409_s10 }
   0x6   : > { %p72_p1 = scmp.eq.s32.totalorder %s71_s17, 0  ;;  %p85_p2 = scmp.eq.s32.totalorder %s457_s13, 2 }
   0x7   : > { %p90_p3 = scmp.ne.s32.totalorder %s409_s10, %s405_s9  ;;  %p91_p4 = scmp.eq.s32.totalorder %s296_s14, 2 }
   0x8   : > { %s472_s18 = scalar_select %p72_p1, %s413_s11, %s74_s16  }
   0x9   : > { %p474_p5 = por %p85_p2, %p84_p0  ;;  %p478_p6 = por %p91_p4, %p90_p3 }
   0xa   : > { %p299_p7 = scmp.ge.s32.totalorder %s417_s12, 1  ;;  %p123_p8 = scmp.lt.s32.totalorder %s417_s12, 4 }
   0xc   : > { %p124_p9 = pnand %p299_p7, %p123_p8 }
   0xd   : > { %p148_p10 = scmp.lt.s32.totalorder (!%p124_p9), %s457_s13, 2  ;;  %v419_v0 = vmov (!%p124_p9), 0   ;;  %vm157_vm0 = vcmask (!%p124_p9), 130048   ;;  %v172_v7 = vlaneseq (!%p124_p9)  ;;  %s303_s29 = sshll.u32 (!%p124_p9), %s457_s13, 3  ;;  %vm197_vm3 = vcmask (!%p124_p9), 7168  }
   0xe   : > { %127 = sbr.rel (%p124_p9) target bundleno = 565 (0x235), region = 28  ;;  %350 = vset.pattern.permute.xlu0 (!%p124_p9), %v419_v0  ;;  %v193_v21 = vstv (!%p124_p9), %s303_s29  ;;  %s145_s30 = sand.u32 (!%p124_p9), 1, %s409_s10  }
   0xf   : > { %v173_v8 = vand.u32 (!%p124_p9), 127, %v172_v7  ;;  %v192_v17 = vshrl.u32 (!%p124_p9), %v172_v7, 7  ;;  %s300_s3 = sshll.u32 (!%p124_p9), %s145_s30, 3  ;;  %s305_s6 = sshll.u32 (!%p124_p9), %s457_s13, 7 }
  0x10   : > { %s147_s4 = scalar_lea.vmem (!%p124_p9), [#allocation2], %s300_s3  ;;  %s504_s16 = scalar_lea.hbm (!%p124_p9), %s546_s2, %s305_s6 }
  0x11   : > { %v194_v24 = vadd.s32 (!%p124_p9), %v193_v21, %v192_v17  ;;  %s225_s5 = sshll.u32 (!%p124_p9), %s147_s4, 4  ;;  %s212_s17 = scalar_lea.sflag (!%p124_p9), [#allocation3], %s145_s30  ;;  %s499_s5 = int_to_ptr.vmem [resolvable:$true] %s225_s5 }
  0x13   : > { %vm195_vm2 = vcmp.lt.s32.totalorder (!%p124_p9), %v194_v24, 20 }
  0x15   : > { %s149_s21 = scalar_select %p148_p10, %s457_s13, 2 }
  0x16   : > { %s420_s13 = smov [#allocation2]  }
  0x17   : > { %s301_s22 = sshll.u32 %s149_s21, 3  ;;  %s355_s21 = scalar_lea.vmem %s499_s5, 128 }
  0x18   : > { %s151_s25 = scalar_lea.vmem %s544_s0, %s301_s22  ;;  %s155_s28 = scalar_lea.vmem %s545_s1, %s301_s22 }
  0x19   : > { %v156_v1 = vld [vmem:[%s151_s25] sm:$0xff]  ;;  %p356_p11 = scmp.ne.s32.totalorder %s499_s5, %s355_s21  ;;  %s359_s22 = sshll.u32 %s420_s13, 4  ;;  %s360_s22 = int_to_ptr.vmem [resolvable:$false] %s359_s22 }
  0x1a   : > { %v158_v2 = vsel %vm157_vm0, %v156_v1, -inf  ;;  %v174_v3 = vld [vmem:[%s155_s28] sm:$0xff]  ;;  %v169_v14 = vsel %vm157_vm0, %v156_v1, 0.0  ;;  %s361_s23 = scalar_lea.vmem %s360_s22, 256  ;;  %p362_p0 = scmp.lt.s32.totalorder %s499_s5, %s360_s22 }
  0x1b   : > { %159 = vmax.xlane.f32.xlu0 %v158_v2  ;;  %p357_p12 = pnand %p356_p11, %p474_p5  ;;  %p363_p1 = scmp.lt.s32.totalorder %s361_s23, %s355_s21 }
  0x1d   : > { %p358_p13 = pneg %p357_p12  ;;  %p364_p2 = por %p363_p1, %p362_p0 }
  0x1f   : > { %p365_p3 = pnand %p364_p2, %p358_p13 }
  0x31   : > { %176 = vperm.xlu0 %350, %v174_v3  }
  0xa8   : > { %v160_v4 = vpop.xlane.xlu0 %159 }
  0xa9   : > { %v161_v5 = vsub.f32 %v156_v1, %v160_v4  ;;  %v186_v19 = vmul.f32 16.0, %v160_v4 }
  0xab   : > { %v162_v6 = vmul.f32 1.442695, %v161_v5 }
  0xad   : > { %351 = vpow2.f32 %v162_v6 }
  0xb0   : > { %v177_v9 = vpop.permute.xlu0 %176 }
  0xb1   : > { %vm178_vm1 = vcmp.eq.s32.totalorder %v173_v8, %v177_v9 }
  0xb2   : > { %v179_v11 = vsel %vm178_vm1, %v156_v1, 0.0 }
  0xb3   : > { %v180_v13 = vsel %vm157_vm0, %v179_v11, 0.0 }
  0xb7   : > { %v352_v10 = vpop.eup %351 }
  0xb8   : > { %v164_v12 = vsel %vm157_vm0, %v352_v10, 0.0 }
  0xb9   : > { %165 = vadd.xlane.f32.xlu1 %v164_v12 }
  0xbd   : > { %181 = vadd.xlane.f32.xlu1 %v180_v13 }
  0xc1   : > { %170 = vadd.xlane.f32.xlu1 %v169_v14 }
 0x146   : > { %v166_v15 = vpop.xlane.xlu1 %165 }
 0x147   : > { %353 = vlog2.f32 %v166_v15 }
 0x14a   : > { %v182_v16 = vpop.xlane.xlu1 %181 }
 0x14b   : > { %v183_v18 = vsub.f32 %v182_v16, %v160_v4 }
 0x14d   : > { %v184_v26 = vmul.f32 0.9, %v183_v18 }
 0x14e   : > { %v171_v20 = vpop.xlane.xlu1 %170 }
 0x14f   : > { %v187_v22 = vsub.f32 %v171_v20, %v186_v19 }
 0x151   : > { %v354_v23 = vpop.eup %353  ;;  %v188_v28 = vmul.f32 0.00625, %v187_v22 }
 0x152   : > { %v168_v25 = vmul.f32 0.6931472, %v354_v23 }
 0x154   : > { %v185_v27 = vsub.f32 %v168_v25, %v184_v26 }
 0x156   : > { %v189_v29 = vsub.f32 %v185_v27, %v188_v28 }
 0x158   : > { %v196_v30 = vsel %vm195_vm2, %v189_v29, 0.0 }
 0x159   : > { %v198_v31 = vsel %vm197_vm3, %v196_v30, 0.0 }
 0x15a   : > { %199 = vadd.xlane.f32.xlu1 %v198_v31 }
 0x1e7   : > { %v200_v32 = vpop.xlane.xlu1 %199 }
 0x1e8   : > { %v201_v33 = vrot.slane %v200_v32, 4 }
 0x1ea   : > { %v202_v34 = vadd.f32 %v201_v33, %v200_v32 }
 0x1ec   : > { %v203_v35 = vrot.slane %v202_v34, 2 }
 0x1ee   : > { %v204_v36 = vadd.f32 %v203_v35, %v202_v34 }
 0x1f0   : > { %v205_v37 = vrot.slane %v204_v36, 1 }
 0x1f2   : > { %v206_v38 = vadd.f32 %v205_v37, %v204_v36 }
 0x1f4   : > { %308 = vpush %v206_v38 }
 0x225   : > { %s309_s7 = spop %308 }
 0x226   : > { %v208_v39 = vstv %s309_s7 }
 0x227   : > { %210 = vst [vmem:[%s147_s4] sm:$0xff] %v208_v39 }
 0x228   : > { %368 = shalt.err (!%p365_p3)
}
 0x229   : > { %s369_s24 = scalar_lea.hbm %s504_s16, 128  ;;  %s373_s27 = scalar_lea.hbm %s546_s2, 384 }
 0x22a   : > { %p370_p4 = scmp.ne.s32.totalorder %s504_s16, %s369_s24  ;;  %p374_p9 = scmp.lt.u32.totalorder %s504_s16, %s546_s2 }
 0x22b   : > { %p375_p10 = scmp.lt.u32.totalorder %s373_s27, %s369_s24  ;;  %p377_p12 = scmp.lt.u32.totalorder %s369_s24, %s504_s16 }
 0x22c   : > { %p371_p7 = pnand %p370_p4, %p474_p5 }
 0x22d   : > { %p376_p11 = por %p375_p10, %p374_p9 }
 0x22e   : > { %p372_p8 = pneg %p371_p7 }
 0x22f   : > { %p378_p13 = por %p377_p12, %p376_p11 }
 0x231   : > { %p379_p0 = pnand %p378_p13, %p372_p8 }
 0x233   : > { %382 = shalt.err (!%p379_p0)
}
 0x234   : > { %310 = dma.vmem_to_hbm [thread:$0]  (%p474_p5), %s499_s5, 128, %s504_s16, %s212_s17  }
 0x235 PF: > { %p316_p1 = scmp.ge.s32.totalorder %s417_s12, 2  ;;  %s237_s30 = sand.u32 1, %s405_s9  }
 0x236   : > { %s238_s3 = scalar_lea.sflag [#allocation3], %s237_s30 }
 0x237   : > { %p313_p2 = pnand %p316_p1, %p478_p6 }
 0x239   : > { %400 = dma.done.wait (!%p313_p2), %s238_s3, 128  }
 0x23a   : > { %402 = vsyncadd (!%p313_p2), %s238_s3, 4294967168  ;;  %p12_p3 = scmp.ge.s32.totalorder %s461_s15, 5   ;;  %s549_s9 = smov %s409_s10 }
 0x23b   : > { %s550_s10 = smov %s413_s11  ;;  %s551_s11 = smov %s472_s18 }
 0x23c   : > { %s552_s12 = smov %s461_s15  ;;  %14 = sbr.rel (!%p12_p3) target bundleno = 3 (0x3), region = 66 }
 0x243   :  { %243 = vsyncpa [#allocation3], 1 }
 0x244   :  { %245 = vsyncpa [#allocation3 + $0x1], 1 }

</bundles_post_ra>
